<compile_context>
chip_gen: v5e
topology: v5e:2x2
jax: 0.10.0
libtpu: 0.0.40
codegen_flags: <defaults>
</compile_context>

<pallas_src>
import jax
import jax.numpy as jnp
from jax.experimental import pallas as pl
from jax.experimental.pallas import tpu as pltpu


def mlp_kernel(x_ref, w1_ref, b1_ref, w2_ref, b2_ref, o_ref):
    # x_ref : (TM, input_dim)                                [pipelined tile]
    # w1_ref: (input_dim, hidden_dim), b1_ref: (1, hidden)   [whole, resident VMEM]
    # w2_ref: (hidden_dim, out_pad),   b2_ref: (1, out_pad)  [whole, resident VMEM]
    # o_ref : (TM, out_pad)   out_pad is a multiple of 128 -> lane-dense stores
    x = x_ref[...].astype(w1_ref.dtype)
    h = jnp.tanh(
        jnp.dot(x, w1_ref[...], preferred_element_type=jnp.float32) + b1_ref[...]
    )
    out = (
        jnp.dot(h.astype(w2_ref.dtype), w2_ref[...],
                preferred_element_type=jnp.float32)
        + b2_ref[...]
    )
    o_ref[...] = out.astype(o_ref.dtype)


def _round_up(n, m):
    return ((n + m - 1) // m) * m


def _vmem_capacity_bytes():
    try:
        return int(pltpu.get_tpu_info().vmem_capacity_bytes)
    except Exception:
        return 64 * 2**20  # conservative: v7x per-TensorCore VMEM


def mlp_forward(x, w1, b1, w2, b2, *, tile_m_max=2048, use_bf16=False):
    # TODO(synk): training-mode dropout not implemented; forward matches eval()
    # semantics (nn.Dropout is identity at inference).
    batch, input_dim = x.shape
    assert w1.ndim == 2 and w1.shape[0] == input_dim, (
        "w1 must be (input_dim, hidden_dim) — transpose PyTorch (out,in) weights")
    hidden_dim = w1.shape[1]
    assert w2.ndim == 2 and w2.shape[0] == hidden_dim, (
        "w2 must be (hidden_dim, output_dim) — transpose PyTorch (out,in) weights")
    output_dim = w2.shape[1]

    b1 = jnp.reshape(b1, (1, hidden_dim))
    b2 = jnp.reshape(b2, (1, output_dim))

    out_dtype = x.dtype
    if use_bf16:  # numerics change: bf16 MXU inputs, f32 accumulation
        x = x.astype(jnp.bfloat16)
        w1 = w1.astype(jnp.bfloat16)
        w2 = w2.astype(jnp.bfloat16)
    b1 = b1.astype(jnp.float32)
    b2 = b2.astype(jnp.float32)

    # --- Lane-dense output: pad output columns up to a multiple of 128. ---
    out_pad = max(128, _round_up(output_dim, 128))
    if out_pad != output_dim:
        w2p = jnp.pad(w2, ((0, 0), (0, out_pad - output_dim)))
        b2p = jnp.pad(b2, ((0, 0), (0, out_pad - output_dim)))
    else:
        w2p, b2p = w2, b2

    # --- VMEM budget (generation-aware, with headroom). ---
    phys_vmem = _vmem_capacity_bytes()
    vmem_cap = phys_vmem * 3 // 4
    weight_bytes = int(w1.nbytes + b1.nbytes + w2p.nbytes + b2p.nbytes)
    if weight_bytes > int(0.4 * phys_vmem):
        # TODO(synk): K/N-tiled accumulator path (extra "arbitrary" grid axis +
        # f32 VMEM acc scratch, init/finalize via pl.when) for weights that do
        # not fit comfortably resident in VMEM.
        raise NotImplementedError("weights too large for resident-VMEM strategy")

    out_itemsize = jnp.dtype(out_dtype).itemsize
    per_row_io = x.dtype.itemsize * input_dim + out_itemsize * out_pad

    # --- Batch tiling: large tiles, but >=2 grid steps when batch > 8 so the
    #     parallel axis shards across both v7x TensorCores. ---
    tm_vmem = max(8, int((vmem_cap - weight_bytes) // (2 * per_row_io)) // 8 * 8)
    if batch <= 8:
        tm = batch
    else:
        tm = min(tile_m_max, _round_up(pl.cdiv(batch, 2), 8), tm_vmem)
    grid = (pl.cdiv(batch, tm),)  # partial last tile handled by Pallas (masked stores)

    vmem_limit = int(min(vmem_cap,
                         max(16 * 2**20,
                             weight_bytes + 2 * tm * per_row_io + 2 * 2**20)))

    flops = 2 * batch * (input_dim * hidden_dim + hidden_dim * out_pad)
    cost = pl.CostEstimate(
        flops=int(flops),
        transcendentals=int(batch * hidden_dim),
        bytes_accessed=int(x.nbytes + weight_bytes + batch * out_pad * out_itemsize),
    )

    out = pl.pallas_call(
        mlp_kernel,
        out_shape=jax.ShapeDtypeStruct((batch, out_pad), out_dtype),
        grid_spec=pltpu.PrefetchScalarGridSpec(
            num_scalar_prefetch=0,
            grid=grid,
            in_specs=[
                pl.BlockSpec((tm, input_dim), lambda i: (i, 0)),
                # Grid-invariant weights/biases: whole-array, single VMEM copy,
                # no per-step DMA and no double buffering.
                pl.BlockSpec(memory_space=pltpu.MemorySpace.VMEM),
                pl.BlockSpec(memory_space=pltpu.MemorySpace.VMEM),
                pl.BlockSpec(memory_space=pltpu.MemorySpace.VMEM),
                pl.BlockSpec(memory_space=pltpu.MemorySpace.VMEM),
            ],
            out_specs=pl.BlockSpec((tm, out_pad), lambda i: (i, 0)),
        ),
        compiler_params=pltpu.CompilerParams(
            dimension_semantics=("parallel",),
            vmem_limit_bytes=vmem_limit,
        ),
        cost_estimate=cost,
    )(x, w1, b1, w2p, b2p)

    if out_pad != output_dim:
        out = out[:, :output_dim]
    return out


def reference_mlp(x, w1, b1, w2, b2):
    h = jnp.tanh(x @ w1 + b1)
    return h @ w2 + b2


if __name__ == "__main__":
    # Small shapes consistent with the module: batch=8, input_dim=32,
    # hidden_dim=32, output_dim=16 (dropout_rate unused at inference).
    batch, input_dim, hidden_dim, output_dim = 8, 32, 32, 16

    key = jax.random.PRNGKey(0)
    k_x, k_w1, k_b1, k_w2, k_b2 = jax.random.split(key, 5)

    x = jax.random.normal(k_x, (batch, input_dim), dtype=jnp.float32)
    # Deterministic parameter init (uniform, like PyTorch's default Linear init
    # scale), stored as (in, out) for direct x @ W.
    lim1 = 1.0 / (input_dim ** 0.5)
    lim2 = 1.0 / (hidden_dim ** 0.5)
    w1 = jax.random.uniform(k_w1, (input_dim, hidden_dim), jnp.float32, -lim1, lim1)
    b1 = jax.random.uniform(k_b1, (1, hidden_dim), jnp.float32, -lim1, lim1)
    w2 = jax.random.uniform(k_w2, (hidden_dim, output_dim), jnp.float32, -lim2, lim2)
    b2 = jax.random.uniform(k_b2, (1, output_dim), jnp.float32, -lim2, lim2)

    # Small-batch path: one grid step, whole batch as the tile.
    out = jax.block_until_ready(mlp_forward(x, w1, b1, w2, b2))
    ref = reference_mlp(x, w1, b1, w2, b2)
    assert out.shape == (batch, output_dim)
    assert jnp.allclose(out, ref, atol=1e-5, rtol=1e-5)

    # Larger-batch path: >=2 grid steps (megacore) + partial last tile, no pad.
    big_batch = 600
    xb = jax.random.normal(k_x, (big_batch, input_dim), dtype=jnp.float32)
    out_b = jax.block_until_ready(mlp_forward(xb, w1, b1, w2, b2))
    ref_b = reference_mlp(xb, w1, b1, w2, b2)
    assert out_b.shape == (big_batch, output_dim)
    assert jnp.allclose(out_b, ref_b, atol=1e-5, rtol=1e-5)

    # Optional bf16 MXU path (looser tolerance; numerics change behind a flag).
    out_bf = jax.block_until_ready(mlp_forward(xb, w1, b1, w2, b2, use_bf16=True))
    assert out_bf.shape == (big_batch, output_dim)
    assert jnp.allclose(out_bf.astype(jnp.float32), ref_b, atol=1e-1, rtol=1e-1)

    print("KERNEL_OK")
</pallas_src>

<mosaic_0001>
module attributes {stable_mosaic.version = 11 : i64} {
  func.func @mlp_kernel(%arg0: i32, %arg1: memref<8x32xf32, #tpu.memory_space<vmem>>, %arg2: memref<32x32xf32, #tpu.memory_space<vmem>>, %arg3: memref<1x32xf32, #tpu.memory_space<vmem>>, %arg4: memref<32x128xf32, #tpu.memory_space<vmem>>, %arg5: memref<1x128xf32, #tpu.memory_space<vmem>>, %arg6: memref<8x128xf32, #tpu.memory_space<vmem>>) attributes {dimension_semantics = [#tpu.dimension_semantics<parallel>], iteration_bounds = array<i64: 1>, scalar_prefetch = 0 : i64, scratch_operands = 0 : i64, tpu.core_type = #tpu.core_type<tc>, window_params = [{transform_indices = @transform_0, window_bounds = array<i64: 8, 32>}, {pipeline_mode = #tpu.pipeline_mode<synchronous>, transform_indices = @transform_1, window_bounds = array<i64: 32, 32>}, {pipeline_mode = #tpu.pipeline_mode<synchronous>, transform_indices = @transform_2, window_bounds = array<i64: 1, 32>}, {pipeline_mode = #tpu.pipeline_mode<synchronous>, transform_indices = @transform_3, window_bounds = array<i64: 32, 128>}, {pipeline_mode = #tpu.pipeline_mode<synchronous>, transform_indices = @transform_4, window_bounds = array<i64: 1, 128>}, {transform_indices = @transform_5, window_bounds = array<i64: 8, 128>}]} {
    %c0 = arith.constant 0 : index
    %c0_0 = arith.constant 0 : index
    %0 = vector.load %arg1[%c0, %c0_0] : memref<8x32xf32, #tpu.memory_space<vmem>>, vector<8x32xf32>
    %c0_1 = arith.constant 0 : index
    %c0_2 = arith.constant 0 : index
    %1 = vector.load %arg2[%c0_1, %c0_2] : memref<32x32xf32, #tpu.memory_space<vmem>>, vector<32x32xf32>
    %cst = arith.constant dense<0.000000e+00> : vector<8x32xf32>
    %2 = tpu.matmul %0, %1, %cst {dimension_numbers = #tpu.dot_dimension_numbers<[1], [0], [0], [1], [0, 0, 1, 1], [], []>} : vector<8x32xf32>, vector<32x32xf32>, vector<8x32xf32> -> vector<8x32xf32>
    %c0_3 = arith.constant 0 : index
    %c0_4 = arith.constant 0 : index
    %3 = vector.load %arg3[%c0_3, %c0_4] : memref<1x32xf32, #tpu.memory_space<vmem>>, vector<1x32xf32>
    %4 = vector.broadcast %3 : vector<1x32xf32> to vector<8x32xf32>
    %5 = arith.addf %2, %4 : vector<8x32xf32>
    %6 = math.tanh %5 : vector<8x32xf32>
    %c0_5 = arith.constant 0 : index
    %c0_6 = arith.constant 0 : index
    %7 = vector.load %arg4[%c0_5, %c0_6] : memref<32x128xf32, #tpu.memory_space<vmem>>, vector<32x128xf32>
    %cst_7 = arith.constant dense<0.000000e+00> : vector<8x128xf32>
    %8 = tpu.matmul %6, %7, %cst_7 {dimension_numbers = #tpu.dot_dimension_numbers<[1], [0], [0], [1], [0, 0, 1, 1], [], []>} : vector<8x32xf32>, vector<32x128xf32>, vector<8x128xf32> -> vector<8x128xf32>
    %c0_8 = arith.constant 0 : index
    %c0_9 = arith.constant 0 : index
    %9 = vector.load %arg5[%c0_8, %c0_9] : memref<1x128xf32, #tpu.memory_space<vmem>>, vector<1x128xf32>
    %10 = vector.broadcast %9 : vector<1x128xf32> to vector<8x128xf32>
    %11 = arith.addf %8, %10 : vector<8x128xf32>
    %c0_10 = arith.constant 0 : index
    %c0_11 = arith.constant 0 : index
    %12 = vector.load %arg6[%c0_10, %c0_11] : memref<8x128xf32, #tpu.memory_space<vmem>>, vector<8x128xf32>
    tpu.vector_store %arg6[%c0_10, %c0_11], %11 {strides = array<i32>} : memref<8x128xf32, #tpu.memory_space<vmem>>, vector<8x128xf32>,
    return
  }
  func.func @transform_0(%arg0: i32) -> (i32, i32) {
    %c0_i32 = arith.constant 0 : i32
    %c0_i32_0 = arith.constant 0 : i32
    return %arg0, %c0_i32 : i32, i32
  }
  func.func @transform_1(%arg0: i32) -> (i32, i32) {
    %c0_i32 = arith.constant 0 : i32
    %c0_i32_0 = arith.constant 0 : i32
    %c0_i32_1 = arith.constant 0 : i32
    return %c0_i32, %c0_i32_0 : i32, i32
  }
  func.func @transform_2(%arg0: i32) -> (i32, i32) {
    %c0_i32 = arith.constant 0 : i32
    %c0_i32_0 = arith.constant 0 : i32
    %c0_i32_1 = arith.constant 0 : i32
    return %c0_i32, %c0_i32_0 : i32, i32
  }
  func.func @transform_3(%arg0: i32) -> (i32, i32) {
    %c0_i32 = arith.constant 0 : i32
    %c0_i32_0 = arith.constant 0 : i32
    %c0_i32_1 = arith.constant 0 : i32
    return %c0_i32, %c0_i32_0 : i32, i32
  }
  func.func @transform_4(%arg0: i32) -> (i32, i32) {
    %c0_i32 = arith.constant 0 : i32
    %c0_i32_0 = arith.constant 0 : i32
    %c0_i32_1 = arith.constant 0 : i32
    return %c0_i32, %c0_i32_0 : i32, i32
  }
  func.func @transform_5(%arg0: i32) -> (i32, i32) {
    %c0_i32 = arith.constant 0 : i32
    %c0_i32_0 = arith.constant 0 : i32
    return %arg0, %c0_i32 : i32, i32
  }
}

</mosaic_0001>

<bundles_post_ra>
// kernel: tpu_custom_call.1
= control target key start
LH: loop header
LB: loop body
LE: loop exit
PB: predicated region body
PF: predicated region fallthrough
CT: control target
= control target key end

     0   :  { %10 = vsyncpa [#allocation3], 0  ;;  %s320_s0 = inlined_call_operand.hbm [shape: f32[8,32], index: 0, kind: input, shape index: {}]   ;;  %s321_s1 = inlined_call_operand.hbm [shape: f32[32,32], index: 1, kind: input, shape index: {}]   ;;  %s322_s2 = inlined_call_operand.vmem [shape: f32[1,32], index: 2, kind: input, shape index: {}]   ;;  %s323_s3 = inlined_call_operand.hbm [shape: f32[32,128], index: 3, kind: input, shape index: {}]   ;;  %s324_s4 = inlined_call_operand.vmem [shape: f32[1,128], index: 4, kind: input, shape index: {}]   ;;  %s325_s5 = inlined_call_operand.hbm [shape: f32[8,128], index: 5, kind: output, shape index: {}]  }
   0x1   :  { %11 = vsyncpa [#allocation6], 0  ;;  %s28_s20 = sshll.u32 %s321_s1, 4  ;;  %s29_s20 = int_to_ptr.hbm [resolvable:$true] %s28_s20 }
   0x2   :  { %12 = vsyncpa [#allocation4], 0  ;;  %s264_s21 = smov [#allocation5]   ;;  %s18_s25 = sshll.u32 %s320_s0, 4  ;;  %s19_s25 = int_to_ptr.hbm [resolvable:$true] %s18_s25 }
   0x3   :  { %s30_s22 = sshll.u32 %s264_s21, 4  ;;  %s265_s26 = smov 128   ;;  %s31_s22 = int_to_ptr.vmem [resolvable:$true] %s30_s22 }
   0x4   :  { %s266_s27 = smov 8   ;;  %s267_s28 = smov [#allocation2]  }
   0x5   :  { %36 = dma.hbm_to_vmem [thread:$0]  %s29_s20, 512, %s31_s22, [#allocation6], %s265_s26, %s265_s26, %s266_s27  }
   0x6   :  { %s20_s29 = sshll.u32 %s267_s28, 4  ;;  %s43_s7 = sshll.u32 %s323_s3, 4  ;;  %s21_s29 = int_to_ptr.vmem [resolvable:$true] %s20_s29  ;;  %s44_s7 = int_to_ptr.hbm [resolvable:$true] %s43_s7 }
   0x7   :  { %23 = dma.hbm_to_vmem [thread:$0]  %s19_s25, 128, %s21_s29, [#allocation3]  }
   0x8   :  { %s268_s1 = smov [#allocation7]  }
   0x9   :  { %s45_s8 = sshll.u32 %s268_s1, 4  ;;  %s46_s8 = int_to_ptr.vmem [resolvable:$true] %s45_s8 }
   0xa   :  { %51 = dma.hbm_to_vmem [thread:$0]  %s44_s7, 512, %s46_s8, [#allocation6], %s265_s26, %s265_s26, %s266_s27  }
   0xb   :  { %258 = dma.done.wait [#allocation3], 128  }
   0xc   :  { %259 = vsyncadd [#allocation3], 4294967168 }
   0xd   :  { %260 = dma.done.wait [#allocation6], 1024  }
   0xe   :  { %261 = vsyncadd [#allocation6], 4294966272  ;;  %v70_v0 = vld [vmem:[#allocation5 + $0x18] sm:$0xff]  ;;  %v69_v1 = vld [vmem:[#allocation5 + $0x10] sm:$0xff]  ;;  %vm75_vm0 = vcmask 261120   ;;  %s269_s11 = smov [#allocation8]  }
   0xf   :  { %91 = vmatpush.msra.mxu0 %v70_v0  ;;  %v68_v2 = vld [vmem:[#allocation5 + $0x8] sm:$0xff]  ;;  %v67_v3 = vld [vmem:[#allocation5] sm:$0xff]  ;;  %v66_v4 = vld [vmem:[#allocation2] sm:$0xff]  ;;  %s137_s12 = sshll.u32 %s269_s11, 4  ;;  %s139_s15 = sshll.u32 %s325_s5, 4  ;;  %s138_s12 = int_to_ptr.vmem [resolvable:$true] %s137_s12  ;;  %s140_s15 = int_to_ptr.hbm [resolvable:$true] %s139_s15 }
  0x10   :  { %v103_v5 = vld [vmem:[#allocation7 + $0x18] sm:$0xff]  ;;  %v102_v6 = vld [vmem:[#allocation7 + $0x10] sm:$0xff]  ;;  %v101_v7 = vld [vmem:[#allocation7 + $0x8] sm:$0xff] }
  0x11   :  { %92 = vmatpush.msra.mxu0 %v69_v1  ;;  %123 = vmatpush.msra.mxu1 %v103_v5  ;;  %v100_v8 = vld [vmem:[#allocation7] sm:$0xff]  ;;  %v158_v9 = vld [vmem:[%s322_s2] ss:$0 sm:$0xff] }
  0x12   :  { %v159_v13 = vld [vmem:[%s324_s4] ss:$0 sm:$0xff] }
  0x13   :  { %93 = vmatpush.msra.mxu0 %v68_v2  ;;  %124 = vmatpush.msra.mxu1 %v102_v6 }
  0x15   :  { %94 = vmatpush.msra.mxu0 %v67_v3  ;;  %125 = vmatpush.msra.mxu1 %v101_v7 }
  0x16   :  { %150 = vmatmul.msk.f32.vlgmr.msra.gmra.mxu0 %vm75_vm0, %v66_v4 }
  0x17   :  { %126 = vmatpush.msra.mxu1 %v100_v8 }
  0x93   :  { %v96_v10 = vpop.f32.mrf.mxu0 }
  0x94   :  { %v97_v11 = vadd.f32 %v158_v9, %v96_v10 }
  0x96   :  { %160 = vtanh.f32 %v97_v11 }
  0x9c   :  { %v161_v12 = vpop.eup %160 }
  0x9d   :  { %151 = vmatmul.msk.f32.vlgmr.msra.gmra.mxu1 %vm75_vm0, %v161_v12 }
 0x11a   :  { %v128_v14 = vpop.f32.mrf.mxu1 }
 0x11b   :  { %v129_v15 = vadd.f32 %v159_v13, %v128_v14 }
 0x11d   :  { %131 = vst [vmem:[#allocation8] sm:$0xff] %v129_v15 }
 0x11e   :  { %142 = dma.vmem_to_hbm [thread:$0]  %s138_s12, 128, %s140_s15, [#allocation4]  }
 0x11f   :  { %262 = dma.done.wait [#allocation4], 128  }
 0x120   :  { %263 = vsyncadd [#allocation4], 4294967168 }
 0x121   :  { %147 = vsyncpa [#allocation3], 1 }
 0x122   :  { %148 = vsyncpa [#allocation6], 1 }
 0x123   :  { %149 = vsyncpa [#allocation4], 1 }

</bundles_post_ra>
